<compile_context>
chip_gen: v6e
topology: v6e:2x2x1
jax: 0.10.0
libtpu: 0.0.40
codegen_flags: <defaults>
</compile_context>

<pallas_src>
import jax
import jax.numpy as jnp
from jax.experimental import pallas as pl
from jax.experimental.pallas import tpu as pltpu


def _rebnconv_kernel(lhs_ref, t_ref, scale_ref, bias_ref, out_ref):
    # lhs_ref  : [H, 3*Kpad]       bf16  kh-fused, lane-packed im2col rows (N squeezed)
    # t_ref    : [3*Kpad, W*Cout]  bf16  block-Toeplitz conv weights
    # scale_ref: [1, W*Cout]       f32   folded BN scale (per output lane)
    # bias_ref : [1, W*Cout]       f32   folded BN bias (includes conv bias)
    # out_ref  : [H, W*Cout]
    acc = jnp.dot(lhs_ref[...], t_ref[...], preferred_element_type=jnp.float32)
    y = jnp.maximum(acc * scale_ref[...] + bias_ref[...], 0.0)
    out_ref[...] = y.astype(out_ref.dtype)


def rebnconv_forward(x_nchw, params, *, dirate=1, out_dtype=None):
    """REBNCONV forward. x_nchw: [N, Cin, H, W] float32 -> [N, Cout, H, W]."""
    w = params["conv_weight"]          # [Cout, Cin, 3, 3] (PyTorch layout)
    b = params["conv_bias"]            # [Cout]
    gamma = params["bn_weight"]
    beta = params["bn_bias"]
    mean = params["bn_running_mean"]
    var = params["bn_running_var"]
    eps = 1e-5

    n, cin, hh, ww = x_nchw.shape
    cout = w.shape[0]
    d = dirate
    wp = ww + 2 * d
    k = wp * cin                                   # per-kh contraction width
    kpad = ((k + 127) // 128) * 128                # lane-pad K to 128 multiple
    wcout = ww * cout                              # lane-dense output width
    # Output dtype configurable; default keeps PyTorch f32 parity (bf16 halves
    # HBM writeback for memory-bound layers).
    out_dtype = x_nchw.dtype if out_dtype is None else out_dtype

    # Fold conv bias + BN (eval mode) into per-output-lane scale/bias.
    scale_c = gamma / jnp.sqrt(var + eps)                   # [Cout]
    bias_c = beta + scale_c * (b - mean)                    # [Cout]
    scale = jnp.tile(scale_c, ww).reshape(1, wcout).astype(jnp.float32)
    bias = jnp.tile(bias_c, ww).reshape(1, wcout).astype(jnp.float32)

    # NCHW -> lane-packed, kh-fused im2col rows [N, H, 3*kpad] bf16: output row
    # h carries the 3 kh-shifted padded input rows side by side, each
    # zero-padded from (W+2d)*Cin to kpad lanes.  One fused XLA pass
    # (transpose + pad + reshape + cast + concat); NCHW boundary kept for
    # PyTorch parity.
    x_nhwc = jnp.transpose(x_nchw, (0, 2, 3, 1))            # [N, H, W, Cin]
    x_pad = jnp.pad(x_nhwc, ((0, 0), (d, d), (d, d), (0, 0)))
    x_rows = x_pad.reshape(n, hh + 2 * d, k).astype(jnp.bfloat16)
    x_rows = jnp.pad(x_rows, ((0, 0), (0, 0), (0, kpad - k)))
    lhs = jnp.concatenate(
        [x_rows[:, kh * d:kh * d + hh, :] for kh in range(3)], axis=-1)

    # Block-Toeplitz weights: T[kh*kpad + wp*Cin + ci, w*Cout + co] =
    # W[kh, kw, ci, co] when wp == w + kw*d (zero elsewhere, incl. K padding).
    # Folds the kw shift + Cin contraction; stacking kh on K turns the full
    # 3x3 dilated conv into a single [H, 3*kpad] x [3*kpad, W*Cout] matmul.
    w_hwio = jnp.transpose(w, (2, 3, 1, 0))                 # [3, 3, Cin, Cout]
    sel = (jnp.arange(wp)[:, None, None]
           == jnp.arange(ww)[None, :, None] + d * jnp.arange(3)[None, None, :]
           ).astype(w_hwio.dtype)                           # [Wp, W, 3]
    t = jnp.einsum("pwk,hkio->hpiwo", sel, w_hwio)          # [3, Wp, Cin, W, Cout]
    t = t.reshape(3, k, wcout)
    t = jnp.pad(t, ((0, 0), (0, kpad - k), (0, 0)))         # zero the padded K rows
    t = t.reshape(3 * kpad, wcout).astype(jnp.bfloat16)

    flops = 2 * n * hh * ww * 9 * cin * cout
    out_bytes = n * hh * wcout * jnp.dtype(out_dtype).itemsize
    bytes_accessed = (lhs.size * 2 + t.size * 2
                      + (scale.size + bias.size) * 4 + out_bytes)

    # VMEM budget: double-buffered lhs/out blocks + resident weight.  Tiny at
    # this size, but derived explicitly so larger layers stay inside v7x's
    # 64 MiB physical VMEM.
    vmem_bytes = (2 * hh * 3 * kpad * 2 + 3 * kpad * wcout * 2
                  + 2 * hh * wcout * jnp.dtype(out_dtype).itemsize
                  + 2 * wcout * 4)
    vmem_limit = int(min(max(4 * vmem_bytes, 4 << 20), 48 << 20))

    out_packed = pl.pallas_call(
        _rebnconv_kernel,
        out_shape=jax.ShapeDtypeStruct((n, hh, wcout), out_dtype),
        grid=(n,),
        in_specs=[
            pl.BlockSpec((None, hh, 3 * kpad), lambda i: (i, 0, 0)),   # lhs
            pl.BlockSpec((3 * kpad, wcout), lambda i: (0, 0)),         # T (resident)
            pl.BlockSpec((1, wcout), lambda i: (0, 0)),                # scale
            pl.BlockSpec((1, wcout), lambda i: (0, 0)),                # bias
        ],
        out_specs=pl.BlockSpec((None, hh, wcout), lambda i: (i, 0, 0)),
        compiler_params=pltpu.CompilerParams(
            dimension_semantics=("parallel",),
            vmem_limit_bytes=vmem_limit),
        cost_estimate=pl.CostEstimate(
            flops=flops, transcendentals=0, bytes_accessed=int(bytes_accessed)),
    )(lhs, t, scale, bias)

    # [N, H, W*Cout] -> NCHW to match the PyTorch output convention.
    out_nhwc = out_packed.reshape(n, hh, ww, cout).astype(x_nchw.dtype)
    return jnp.transpose(out_nhwc, (0, 3, 1, 2))


def _reference(x_nchw, params, *, dirate=1):
    """Pure-JAX reference (lax conv) for a sanity check."""
    w = params["conv_weight"]
    b = params["conv_bias"]
    eps = 1e-5
    y = jax.lax.conv_general_dilated(
        x_nchw, w,
        window_strides=(1, 1),
        padding=[(dirate, dirate), (dirate, dirate)],
        rhs_dilation=(dirate, dirate),
        dimension_numbers=("NCHW", "OIHW", "NCHW"),
    ) + b[None, :, None, None]
    scale = params["bn_weight"] / jnp.sqrt(params["bn_running_var"] + eps)
    y = (y - params["bn_running_mean"][None, :, None, None]) * scale[None, :, None, None]
    y = y + params["bn_bias"][None, :, None, None]
    return jnp.maximum(y, 0.0)


def init_params(key, in_ch, out_ch):
    ks = jax.random.split(key, 6)
    fan_in = in_ch * 9
    bound = 1.0 / jnp.sqrt(fan_in)
    return {
        "conv_weight": jax.random.uniform(ks[0], (out_ch, in_ch, 3, 3),
                                          jnp.float32, -bound, bound),
        "conv_bias": jax.random.uniform(ks[1], (out_ch,), jnp.float32, -bound, bound),
        "bn_weight": jnp.ones((out_ch,), jnp.float32)
        + 0.1 * jax.random.normal(ks[2], (out_ch,), jnp.float32),
        "bn_bias": 0.1 * jax.random.normal(ks[3], (out_ch,), jnp.float32),
        "bn_running_mean": 0.1 * jax.random.normal(ks[4], (out_ch,), jnp.float32),
        "bn_running_var": jnp.ones((out_ch,), jnp.float32)
        + 0.05 * jax.random.uniform(ks[5], (out_ch,), jnp.float32),
    }


if __name__ == "__main__":
    key = jax.random.PRNGKey(0)
    k_x, k_p = jax.random.split(key)

    N, CIN, COUT, H, W = 2, 4, 8, 16, 16
    DIRATE = 1

    x = jax.random.normal(k_x, (N, CIN, H, W), jnp.float32)
    params = init_params(k_p, CIN, COUT)

    out = rebnconv_forward(x, params, dirate=DIRATE)
    out = jax.block_until_ready(out)

    ref = _reference(x, params, dirate=DIRATE)
    assert out.shape == (N, COUT, H, W)
    # Input activations/weights are fed to the MXU in bf16 (f32 accumulation),
    # so the tolerance vs the f32 reference is intentionally loose.
    assert jnp.allclose(out, ref, atol=5e-2, rtol=5e-2), "mismatch vs reference"

    print("KERNEL_OK")
</pallas_src>

<mosaic_0001>
module attributes {stable_mosaic.version = 11 : i64} {
  func.func @_rebnconv_kernel(%arg0: i32, %arg1: memref<1x16x384xbf16, #tpu.memory_space<vmem>>, %arg2: memref<384x128xbf16, #tpu.memory_space<vmem>>, %arg3: memref<1x128xf32, #tpu.memory_space<vmem>>, %arg4: memref<1x128xf32, #tpu.memory_space<vmem>>, %arg5: memref<1x16x128xf32, #tpu.memory_space<vmem>>) attributes {dimension_semantics = [#tpu.dimension_semantics<parallel>], iteration_bounds = array<i64: 2>, scalar_prefetch = 0 : i64, scratch_operands = 0 : i64, tpu.core_type = #tpu.core_type<tc>, window_params = [{transform_indices = @transform_0, window_bounds = array<i64: 1, 16, 384>}, {pipeline_mode = #tpu.pipeline_mode<synchronous>, transform_indices = @transform_1, window_bounds = array<i64: 384, 128>}, {pipeline_mode = #tpu.pipeline_mode<synchronous>, transform_indices = @transform_2, window_bounds = array<i64: 1, 128>}, {pipeline_mode = #tpu.pipeline_mode<synchronous>, transform_indices = @transform_3, window_bounds = array<i64: 1, 128>}, {transform_indices = @transform_4, window_bounds = array<i64: 1, 16, 128>}]} {
    %c0 = arith.constant 0 : index
    %c0_0 = arith.constant 0 : index
    %c0_1 = arith.constant 0 : index
    %0 = vector.load %arg1[%c0, %c0_0, %c0_1] : memref<1x16x384xbf16, #tpu.memory_space<vmem>>, vector<1x16x384xbf16>
    %1 = vector.shape_cast %0 : vector<1x16x384xbf16> to vector<16x384xbf16>
    %c0_2 = arith.constant 0 : index
    %c0_3 = arith.constant 0 : index
    %2 = vector.load %arg2[%c0_2, %c0_3] : memref<384x128xbf16, #tpu.memory_space<vmem>>, vector<384x128xbf16>
    %cst = arith.constant dense<0.000000e+00> : vector<16x128xf32>
    %3 = tpu.matmul %1, %2, %cst {dimension_numbers = #tpu.dot_dimension_numbers<[1], [0], [0], [1], [0, 0, 1, 1], [], []>} : vector<16x384xbf16>, vector<384x128xbf16>, vector<16x128xf32> -> vector<16x128xf32>
    %c0_4 = arith.constant 0 : index
    %c0_5 = arith.constant 0 : index
    %4 = vector.load %arg3[%c0_4, %c0_5] : memref<1x128xf32, #tpu.memory_space<vmem>>, vector<1x128xf32>
    %5 = vector.broadcast %4 : vector<1x128xf32> to vector<16x128xf32>
    %6 = arith.mulf %3, %5 : vector<16x128xf32>
    %c0_6 = arith.constant 0 : index
    %c0_7 = arith.constant 0 : index
    %7 = vector.load %arg4[%c0_6, %c0_7] : memref<1x128xf32, #tpu.memory_space<vmem>>, vector<1x128xf32>
    %8 = vector.broadcast %7 : vector<1x128xf32> to vector<16x128xf32>
    %9 = arith.addf %6, %8 : vector<16x128xf32>
    %cst_8 = arith.constant 0.000000e+00 : f32
    %10 = vector.broadcast %cst_8 : f32 to vector<16x128xf32>
    %11 = arith.maximumf %9, %10 : vector<16x128xf32>
    %c0_9 = arith.constant 0 : index
    %c0_10 = arith.constant 0 : index
    %c0_11 = arith.constant 0 : index
    %12 = vector.load %arg5[%c0_9, %c0_10, %c0_11] : memref<1x16x128xf32, #tpu.memory_space<vmem>>, vector<1x16x128xf32>
    %13 = vector.shape_cast %12 : vector<1x16x128xf32> to vector<16x128xf32>
    %14 = vector.shape_cast %11 : vector<16x128xf32> to vector<1x16x128xf32>
    tpu.vector_store %arg5[%c0_9, %c0_10, %c0_11], %14 {strides = array<i32>} : memref<1x16x128xf32, #tpu.memory_space<vmem>>, vector<1x16x128xf32>,
    return
  }
  func.func @transform_0(%arg0: i32) -> (i32, i32, i32) {
    %c0_i32 = arith.constant 0 : i32
    %c0_i32_0 = arith.constant 0 : i32
    %c0_i32_1 = arith.constant 0 : i32
    return %arg0, %c0_i32, %c0_i32_0 : i32, i32, i32
  }
  func.func @transform_1(%arg0: i32) -> (i32, i32) {
    %c0_i32 = arith.constant 0 : i32
    %c0_i32_0 = arith.constant 0 : i32
    %c0_i32_1 = arith.constant 0 : i32
    return %c0_i32, %c0_i32_0 : i32, i32
  }
  func.func @transform_2(%arg0: i32) -> (i32, i32) {
    %c0_i32 = arith.constant 0 : i32
    %c0_i32_0 = arith.constant 0 : i32
    %c0_i32_1 = arith.constant 0 : i32
    return %c0_i32, %c0_i32_0 : i32, i32
  }
  func.func @transform_3(%arg0: i32) -> (i32, i32) {
    %c0_i32 = arith.constant 0 : i32
    %c0_i32_0 = arith.constant 0 : i32
    %c0_i32_1 = arith.constant 0 : i32
    return %c0_i32, %c0_i32_0 : i32, i32
  }
  func.func @transform_4(%arg0: i32) -> (i32, i32, i32) {
    %c0_i32 = arith.constant 0 : i32
    %c0_i32_0 = arith.constant 0 : i32
    %c0_i32_1 = arith.constant 0 : i32
    return %arg0, %c0_i32, %c0_i32_0 : i32, i32, i32
  }
}

</mosaic_0001>

<bundles_post_ra>
// kernel: tpu_custom_call.1
= control target key start
LH: loop header
LB: loop body
LE: loop exit
PB: predicated region body
PF: predicated region fallthrough
CT: control target
= control target key end

     0   :  { %9 = vsyncpa [#allocation3], 0  ;;  %s1184_s0 = inlined_call_operand.hbm [shape: bf16[2,16,384], index: 0, kind: input, shape index: {}]   ;;  %s1185_s1 = inlined_call_operand.hbm [shape: bf16[384,128], index: 1, kind: input, shape index: {}]   ;;  %s1186_s2 = inlined_call_operand.vmem [shape: f32[1,128], index: 2, kind: input, shape index: {}]   ;;  %s1187_s3 = inlined_call_operand.vmem [shape: f32[1,128], index: 3, kind: input, shape index: {}]   ;;  %s1188_s4 = inlined_call_operand.hbm [shape: f32[2,16,128], index: 4, kind: output, shape index: {}]  }
   0x1   :  { %11 = vsyncpa [#allocation3 + $0x1], 0 }
   0x2   :  { %12 = vsyncpa [#allocation6], 0 }
   0x3   :  { %13 = vsyncpa [#allocation4], 0 }
   0x4   :  { %15 = vsyncpa [#allocation4 + $0x1], 0  ;;  %s995_s15 = smov 0   ;;  %s997_s16 = smov 0  }
   0x5   :  { %s999_s17 = smov 0   ;;  %s1001_s18 = smov 0  }
   0x6 LB: > { %s1016_s19 = sadd.s32 4294967295, %s957_s18   ;;  %s645_s20 = sadd.s32 4294967294, %s957_s18   ;;  %s957_s18 = sphi %s1001_s18, %s1210_s18   ;;  %s953_s17 = sphi %s999_s17, %s1209_s17   ;;  %s949_s16 = sphi %s997_s16, %s1208_s16   ;;  %s945_s15 = sphi %s995_s15, %s1207_s15  }
   0x7   : > { %p41_p0 = scmp.ne.s32.totalorder %s949_s16, %s945_s15  ;;  %p1189_p1 = scmp.eq.s32.totalorder %s1016_s19, 0 }
   0x8   : > { %p134_p3 = scmp.eq.s32.totalorder %s645_s20, 1  ;;  %p646_p5 = scmp.ge.s32.totalorder %s957_s18, 1 }
   0x9   : > { %p1025_p4 = por %p1189_p1, %p41_p0  ;;  %p141_p7 = scmp.lt.s32.totalorder %s957_s18, 3 }
   0xa   : > { %p1030_p6 = por %p134_p3, %p41_p0  ;;  %s959_s24 = smov [#allocation5]  }
   0xb   : > { %s1193_s21 = scalar_select %p1025_p4, 1, 0 }
   0xc   : > { %s1194_s22 = scalar_select %p1030_p6, 1, 0 }
   0xd   : > { %p1035_p8 = pnand %p646_p5, %p141_p7  ;;  %s153_s25 = sshll.u32 %s959_s24, 4  ;;  %s154_s25 = int_to_ptr.vmem [resolvable:$true] %s153_s25 }
   0xe   : > { %s1049_s27 = sadd.s32 1, %s957_s18   ;;  %s28_s28 = sadd.s32 1, %s953_s17 }
   0xf   : > { %s1195_s23 = scalar_select %p1035_p8, 1, 0 }
  0x10   : > { %p750_p9 = pneg %p1035_p8  ;;  %s25_s29 = ssub.s32 %s957_s18, %s1049_s27 }
  0x11   : > { %s846_s30 = scalar_lea.vmem %s154_s25, 3072  ;;  %p854_p5 = scmp.lt.s32.totalorder %s154_s25, %s154_s25 }
  0x12   : > { %p1044_p11 = pnand %p750_p9, %p1189_p1  ;;  %p847_p13 = scmp.ne.s32.totalorder %s154_s25, %s846_s30 }
  0x13   : > { %p855_p7 = scmp.lt.s32.totalorder %s846_s30, %s846_s30 }
  0x14   : > { %p837_p12 = pneg %p1044_p11 }
  0x15   : > { %p856_p10 = por %p855_p7, %p854_p5 }
  0x16   : > { %p849_p0 = pnand %p847_p13, %p837_p12 }
  0x18   : > { %p850_p3 = pneg %p849_p0 }
  0x1a   : > { %p857_p2 = pnand %p856_p10, %p850_p3 }
  0x1c   : > { %860 = shalt.err (!%p857_p2)
}
  0x1d   : > { %s960_s5 = smov 64   ;;  %s961_s6 = smov 4  }
  0x1e   : > { %753 = dma.hbm_to_vmem [thread:$0]  (!%p1044_p11), %s1185_s1, 3072, %s154_s25, [#allocation6], %s960_s5, %s960_s5, %s961_s6  }
  0x1f   : > { %p26_p9 = scmp.eq.s32.totalorder %s25_s29, 0  ;;  %p35_p12 = scmp.ne.s32.totalorder %s953_s17, %s949_s16 }
  0x20   : > { %p36_p10 = scmp.eq.s32.totalorder %s957_s18, 0  ;;  %p763_p2 = scmp.lt.s32.totalorder %s957_s18, 2 }
  0x21   : > { %s1066_s9 = scalar_select %p26_p9, %s953_s17, %s28_s28  }
  0x22   : > { %p37_p13 = por %p36_p10, %p35_p12  ;;  %p1197_p0 = scmp.eq.s32.totalorder %s1016_s19, 1 }
  0x23   : > { %s173_s11 = sand.u32 1, %s953_s17   ;;  %s740_s12 = smul.u32 384, %s957_s18 }
  0x24   : > { %p1070_p3 = por %p1197_p0, %p35_p12  ;;  %s739_s13 = smul.u32 24, %s173_s11 }
  0x25   : > { %s1079_s24 = scalar_lea.hbm %s1184_s0, %s740_s12  ;;  %p1081_p11 = pnand %p763_p2, %p37_p13 }
  0x26   : > { %s1198_s10 = scalar_select %p1070_p3, 1, 0 }
  0x27   : > { %s177_s26 = scalar_lea.vmem [#allocation2], %s739_s13  ;;  %s1087_s29 = scalar_lea.sflag [#allocation3], %s173_s11 }
  0x28   : > { %s184_s28 = sshll.u32 %s177_s26, 4  ;;  %s861_s30 = scalar_lea.hbm %s1079_s24, 384  ;;  %s1085_s28 = int_to_ptr.vmem [resolvable:$true] %s184_s28 }
  0x29   : > { %p862_p5 = scmp.ne.s32.totalorder %s1079_s24, %s861_s30  ;;  %p863_p7 = pneg %p1081_p11 }
  0x2a   : > { %s866_s7 = scalar_lea.hbm %s1184_s0, 768  ;;  %p867_p10 = scmp.lt.s32.totalorder %s1079_s24, %s1184_s0 }
  0x2b   : > { %p864_p9 = pnand %p863_p7, %p862_p5  ;;  %p868_p2 = scmp.lt.s32.totalorder %s866_s7, %s861_s30 }
  0x2d   : > { %p865_p12 = pneg %p864_p9  ;;  %p869_p13 = por %p868_p2, %p867_p10 }
  0x2f   : > { %p870_p0 = pnand %p869_p13, %p865_p12 }
  0x31   : > { %873 = shalt.err (!%p870_p0)
}
  0x32   : > { %s874_s11 = scalar_lea.vmem %s1085_s28, 384  ;;  %s962_s13 = smov [#allocation2]  }
  0x33   : > { %p875_p1 = scmp.ne.s32.totalorder %s1085_s28, %s874_s11  ;;  %s879_s14 = sshll.u32 %s962_s13, 4  ;;  %s880_s14 = int_to_ptr.vmem [resolvable:$false] %s879_s14 }
  0x34   : > { %s881_s20 = scalar_lea.vmem %s880_s14, 768  ;;  %p882_p9 = scmp.lt.s32.totalorder %s1085_s28, %s880_s14 }
  0x35   : > { %p877_p6 = pnand %p875_p1, %p863_p7  ;;  %p883_p3 = scmp.lt.s32.totalorder %s881_s20, %s874_s11 }
  0x37   : > { %p878_p5 = pneg %p877_p6  ;;  %p884_p4 = por %p883_p3, %p882_p9 }
  0x39   : > { %p885_p8 = pnand %p884_p4, %p878_p5 }
  0x3b   : > { %888 = shalt.err (!%p885_p8)
}
  0x3c   : > { %s963_s26 = smov 192   ;;  %s964_s30 = smov 12  }
  0x3d   : > { %757 = dma.hbm_to_vmem [thread:$0]  (!%p1081_p11), %s1079_s24, 384, %s1085_s28, %s1087_s29, %s963_s26, %s963_s26, %s964_s30  }
  0x3e   : > { %p1200_p1 = scmp.ne.s32.totalorder %s1195_s23, 0 }
  0x3f   : > { %s1111_s5 = sand.u32 (!%p1200_p1), 1, %s949_s16   ;;  %p1201_p4 = scmp.ne.s32.totalorder (!%p1200_p1), %s1193_s21, 0 }
  0x40   : > { %196 = sbr.rel (%p1200_p1) target bundleno = 330 (0x14a), region = 36  ;;  %s199_s7 = scalar_lea.sflag (!%p1200_p1), [#allocation3], %s1111_s5 }
  0x41   : > { %s741_s6 = smul.u32 (!%p1200_p1), 24, %s1111_s5 }
  0x43   : > { %s1115_s8 = scalar_lea.vmem (!%p1200_p1), [#allocation2], %s741_s6 }
  0x45   : > { %932 = dma.done.wait (%p1201_p4), %s199_s7, 384  }
  0x46   : > { %934 = vsyncadd (%p1201_p4), %s199_s7, 4294966912  ;;  %p1202_p6 = scmp.eq.s32.totalorder %s1016_s19, 0 }
  0x48   : > { %936 = dma.done.wait (%p1202_p6), [#allocation6], 3072   ;;  %p1203_p8 = pmov %p1202_p6 }
  0x49   : > { %v965_v0 = vmov 0.0   ;;  %vm966_vm0 = vmmov 0   ;;  %v807_v1 = vld [vmem:[#allocation5 + $0x78] sm:$0xff]   ;;  %v810_v4 = vld [vmem:[#allocation5 + $0x70] sm:$0xff]   ;;  %v813_v7 = vld [vmem:[#allocation5 + $0x68] sm:$0xff]   ;;  %s652_s28 = sshll.u32 %s1111_s5, 4 }
  0x4a   : > { %938 = vsyncadd (%p1203_p8), [#allocation6], 4294964224  ;;  %719 = vmatprep.subr.bf16.mxu1 %v965_v0  ;;  %735 = vmatprep.mubr.msk.bf16.mxu1 %vm966_vm0, %v965_v0  ;;  %v808_v2 = vld [vmem:[#allocation5 + $0xb8] sm:$0xff]   ;;  %v811_v5 = vld [vmem:[#allocation5 + $0xb0] sm:$0xff]   ;;  %s687_s29 = sshll.u32 %s1016_s19, 8  ;;  %s230_s12 = scalar_lea.vmem [#allocation7], %s652_s28 }
  0x4b   : > { %688 = vmatprep.subr.bf16.mxu0 %v807_v1  ;;  %v809_v3 = vld [vmem:[#allocation5 + $0x38] sm:$0xff]   ;;  %720 = vmatpush3.bf16.msra.mxu1 %v808_v2  ;;  %v812_v6 = vld [vmem:[#allocation5 + $0x30] sm:$0xff]   ;;  %v814_v8 = vld [vmem:[#allocation5 + $0xa8] sm:$0xff]   ;;  %s562_s11 = sshll.u32 %s230_s12, 4  ;;  %s1139_s20 = scalar_lea.hbm %s1188_s4, %s687_s29  ;;  %s1141_s11 = int_to_ptr.vmem [resolvable:$true] %s562_s11 }
  0x4c   : > { %689 = vmatpush3.bf16.msra.mxu0 %v809_v3  ;;  %721 = vmatprep.subr.bf16.mxu1 %v965_v0  ;;  %v815_v9 = vld [vmem:[#allocation5 + $0x28] sm:$0xff]   ;;  %v816_v10 = vld [vmem:[#allocation5 + $0x60] sm:$0xff]   ;;  %v819_v13 = vld [vmem:[#allocation5 + $0x58] sm:$0xff]   ;;  %s549_s26 = scalar_lea.sflag [#allocation4], %s1111_s5  ;;  %s889_s30 = scalar_lea.vmem %s1141_s11, 256 }
  0x4d   : > { %690 = vmatprep.subr.bf16.mxu0 %v810_v4  ;;  %v817_v11 = vld [vmem:[#allocation5 + $0xa0] sm:$0xff]   ;;  %v820_v14 = vld [vmem:[#allocation5 + $0x98] sm:$0xff]   ;;  %v822_v16 = vld [vmem:[#allocation5 + $0x50] sm:$0xff]   ;;  %p890_p3 = scmp.ne.s32.totalorder %s1141_s11, %s889_s30  ;;  %p1204_p11 = scmp.ne.s32.totalorder %s1198_s10, 0 }
  0x4e   : > { %v818_v12 = vld [vmem:[#allocation5 + $0x20] sm:$0xff]   ;;  %v821_v15 = vld [vmem:[#allocation5 + $0x18] sm:$0xff]   ;;  %v823_v17 = vld [vmem:[#allocation5 + $0x90] sm:$0xff]   ;;  %s967_s19 = smov [#allocation7]  }
  0x4f   : > { %722 = vmatpush3.bf16.msra.mxu1 %v811_v5  ;;  %v824_v18 = vld [vmem:[#allocation5 + $0x10] sm:$0xff]   ;;  %v825_v19 = vld [vmem:[#allocation5 + $0x48] sm:$0xff]   ;;  %v828_v22 = vld [vmem:[#allocation5 + $0x40] sm:$0xff]   ;;  %p891_p7 = pnand %p890_p3, %p1204_p11  ;;  %s893_s6 = sshll.u32 %s967_s19, 4  ;;  %s894_s6 = int_to_ptr.vmem [resolvable:$false] %s893_s6 }
  0x50   : > { %691 = vmatpush3.bf16.msra.mxu0 %v812_v6  ;;  %723 = vmatprep.subr.bf16.mxu1 %v965_v0  ;;  %v826_v20 = vld [vmem:[#allocation5 + $0x88] sm:$0xff]   ;;  %v829_v24 = vld [vmem:[#allocation5 + $0x80] sm:$0xff]   ;;  %v680_v34 = vld [vmem:[%s1186_s2] ss:$0 sm:$0xff]  ;;  %s895_s7 = scalar_lea.vmem %s894_s6, 512  ;;  %p896_p10 = scmp.lt.s32.totalorder %s1141_s11, %s894_s6 }
  0x51   : > { %692 = vmatprep.subr.bf16.mxu0 %v813_v7  ;;  %v827_v21 = vld [vmem:[#allocation5 + $0x8] sm:$0xff]   ;;  %v830_v25 = vld [vmem:[#allocation5] sm:$0xff]   ;;  %v681_v38 = vld [vmem:[%s1187_s3] ss:$0 sm:$0xff]  ;;  %p892_p12 = pneg %p891_p7  ;;  %p897_p2 = scmp.lt.s32.totalorder %s895_s7, %s889_s30 }
  0x52   : > { %v833_v23 = vld [vmem:[%s1115_s8 + $0x4] ss:$12 sps:$4 sm:$0xff]   ;;  %v834_v26 = vld [vmem:[%s1115_s8 + $0x8] ss:$12 sps:$4 sm:$0xff]   ;;  %v831_v27 = vld [vmem:[%s1115_s8] ss:$12 sps:$4 sm:$0xff]  }
  0x53   : > { %724 = vmatpush3.bf16.msra.mxu1 %v814_v8  ;;  %476 = vmatprep.mubr.bf16.mxu0 %v833_v23  ;;  %p898_p13 = por %p897_p2, %p896_p10 }
  0x54   : > { %693 = vmatpush3.bf16.msra.mxu0 %v815_v9  ;;  %725 = vmatprep.subr.bf16.mxu1 %v965_v0 }
  0x55   : > { %694 = vmatprep.subr.bf16.mxu0 %v816_v10  ;;  %p899_p0 = pnand %p898_p13, %p892_p12 }
  0x57   : > { %726 = vmatpush3.bf16.msra.mxu1 %v817_v11 }
  0x58   : > { %695 = vmatpush3.bf16.msra.mxu0 %v818_v12  ;;  %727 = vmatprep.subr.bf16.mxu1 %v965_v0 }
  0x59   : > { %696 = vmatprep.subr.bf16.mxu0 %v819_v13 }
  0x5b   : > { %728 = vmatpush3.bf16.msra.mxu1 %v820_v14 }
  0x5c   : > { %697 = vmatpush3.bf16.msra.mxu0 %v821_v15  ;;  %729 = vmatprep.subr.bf16.mxu1 %v965_v0 }
  0x5d   : > { %698 = vmatprep.subr.bf16.mxu0 %v822_v16 }
  0x5f   : > { %730 = vmatpush3.bf16.msra.mxu1 %v823_v17 }
  0x60   : > { %699 = vmatpush3.bf16.msra.mxu0 %v824_v18  ;;  %731 = vmatprep.subr.bf16.mxu1 %v965_v0 }
  0x61   : > { %700 = vmatprep.subr.bf16.mxu0 %v825_v19 }
  0x63   : > { %732 = vmatpush3.bf16.msra.mxu1 %v826_v20 }
  0x64   : > { %701 = vmatpush3.bf16.msra.mxu0 %v827_v21  ;;  %733 = vmatprep.subr.bf16.mxu1 %v965_v0 }
  0x65   : > { %702 = vmatprep.subr.bf16.mxu0 %v828_v22 }
  0x67   : > { %734 = vmatpush3.bf16.msra.mxu1 %v829_v24 }
  0x68   : > { %703 = vmatpush3.bf16.msra.mxu0 %v830_v25 }
  0x6a   : > { %736 = vmatmul.mubr.bf16.vlgmr.msra.gmra.mxu1 %v834_v26 }
  0x6b   : > { %477 = vmatmul.mubr.bf16.vlgmr.msra.gmra.mxu0 %v831_v27 }
 0x12a   : > { %v519_v28 = vpop.f32.mrf.mxu1 }
 0x12b   : > { %v704_v29 = vpop.f32.mrf.mxu0 }
 0x12c   : > { %v737_v30 = vpop.f32.mrf.mxu1 }
 0x12d   : > { %v705_v31 = vpop.f32.mrf.mxu0 }
 0x12e   : > { %v706_v32 = vadd.f32 %v705_v31, %v704_v29  ;;  %v522_v33 = vpop.f32.mrf.mxu1 }
 0x12f   : > { %v707_v35 = vpop.f32.mrf.mxu0 }
 0x130   : > { %v520_v36 = vadd.f32 %v706_v32, %v519_v28  ;;  %v738_v37 = vpop.f32.mrf.mxu1 }
 0x131   : > { %v708_v39 = vpop.f32.mrf.mxu0 }
 0x132   : > { %v533_v40 = vmul.f32 %v680_v34, %v520_v36  ;;  %v709_v41 = vadd.f32 %v708_v39, %v707_v35 }
 0x134   : > { %v542_v42 = vadd.f32 %v681_v38, %v533_v40  ;;  %v523_v43 = vadd.f32 %v709_v41, %v522_v33 }
 0x136   : > { %v544_v44 = vmax.f32 %v542_v42, 0.0  ;;  %v534_v45 = vmul.f32 %v680_v34, %v523_v43 }
 0x138   : > { %546 = vst [vmem:[%s230_s12] sm:$0xff] %v544_v44  ;;  %v543_v46 = vadd.f32 %v681_v38, %v534_v45 }
 0x13a   : > { %v545_v47 = vmax.f32 %v543_v46, 0.0 }
 0x13c   : > { %547 = vst [vmem:[%s230_s12 + $0x8] sm:$0xff] %v545_v47 }
 0x13d   : > { %902 = shalt.err (!%p899_p0)
}
 0x13e   : > { %s903_s8 = scalar_lea.hbm %s1139_s20, 256  ;;  %s907_s24 = scalar_lea.hbm %s1188_s4, 512 }
 0x13f   : > { %p904_p5 = scmp.ne.s32.totalorder %s1139_s20, %s903_s8  ;;  %p908_p4 = scmp.lt.s32.totalorder %s1139_s20, %s1188_s4 }
 0x140   : > { %p909_p6 = scmp.lt.s32.totalorder %s907_s24, %s903_s8 }
 0x141   : > { %p905_p9 = pnand %p904_p5, %p1204_p11 }
 0x142   : > { %p910_p8 = por %p909_p6, %p908_p4 }
 0x143   : > { %p906_p1 = pneg %p905_p9 }
 0x145   : > { %p911_p3 = pnand %p910_p8, %p906_p1 }
 0x147   : > { %914 = shalt.err (!%p911_p3)
}
 0x148   : > { %s968_s29 = smov 128   ;;  %s969_s12 = smov 8  }
 0x149   : > { %748 = dma.vmem_to_hbm [thread:$0]  (%p1204_p11), %s1141_s11, 256, %s1139_s20, %s549_s26, %s968_s29, %s968_s29, %s969_s12  }
 0x14a PF: > { %s577_s13 = sand.u32 1, %s945_s15   ;;  %p1205_p7 = scmp.ne.s32.totalorder %s1194_s22, 0 }
 0x14b   : > { %p1206_p12 = scmp.ge.s32.totalorder %s957_s18, 2  ;;  %s578_s14 = scalar_lea.sflag [#allocation4], %s577_s13 }
 0x14d   : > { %p759_p10 = pnand %p1206_p12, %p1205_p7 }
 0x14f   : > { %p760_p2 = pneg %p759_p10 }
 0x151   : > { %940 = dma.done.wait (%p760_p2), %s578_s14, 256  }
 0x152   : > { %942 = vsyncadd (%p760_p2), %s578_s14, 4294967040  ;;  %p18_p13 = scmp.ge.s32.totalorder %s1049_s27, 4   ;;  %s1207_s15 = smov %s949_s16 }
 0x153   : > { %s1208_s16 = smov %s953_s17  ;;  %s1209_s17 = smov %s1066_s9 }
 0x154   : > { %s1210_s18 = smov %s1049_s27  ;;  %20 = sbr.rel (!%p18_p13) target bundleno = 6 (0x6), region = 85 }
 0x159   :  { %583 = vsyncpa [#allocation3], 1 }
 0x15a   :  { %585 = vsyncpa [#allocation3 + $0x1], 1 }
 0x15b   :  { %586 = vsyncpa [#allocation6], 1 }
 0x15c   :  { %587 = vsyncpa [#allocation4], 1 }
 0x15d   :  { %589 = vsyncpa [#allocation4 + $0x1], 1 }

</bundles_post_ra>
